<compile_context>
chip_gen: v6e
topology: v6e:2x2x1
jax: 0.10.0
libtpu: 0.0.40
codegen_flags: <defaults>
</compile_context>

<pallas_src>
import functools

import jax
import jax.numpy as jnp
from jax import lax
from jax.experimental import pallas as pl
from jax.experimental.pallas import tpu as pltpu


def _round_up(v, m):
    return (v + m - 1) // m * m


def _mmd_kernel(i_of_ref, j_of_ref,        # SMEM prefetch: tile coords per grid step
                inv_bw_ref,                # SMEM (kernel_num,) f32: 1/(bandwidth*mul^i)
                row_ref, col_ref,          # VMEM (T, Dp) f32 row / col tiles of `total`
                rn_row_ref, rn_col_ref,    # VMEM (T, 1) / (1, T) f32 squared norms
                s_row_ref, s_col_ref,      # VMEM (T, 1) / (1, T) f32 signs (+1/-1/0)
                out_ref,                   # VMEM (1, 1, T) f32 per-step partial sums
                *, kernel_num, kernel_mul):
    s = pl.program_id(0)
    i = i_of_ref[s]
    j = j_of_ref[s]

    a = row_ref[...]                       # (T, Dp)
    b = col_ref[...]                       # (T, Dp)

    # Gram block on the MXU: gram[p, q] = <a_p, b_q>
    gram = lax.dot_general(a, b, (((1,), (1,)), ((), ())),
                           preferred_element_type=jnp.float32)        # (T, T)

    # L2 block = ||a_p||^2 + ||b_q||^2 - 2 <a_p, b_q>, clamped at 0.
    l2 = jnp.maximum(rn_row_ref[...] + rn_col_ref[...] - 2.0 * gram, 0.0)

    if kernel_mul == 2.0:
        # exp-by-squaring: inv_bw[k-1] = 2 * inv_bw[k], so
        # exp(-l2*inv_bw[k-1]) = exp(-l2*inv_bw[k])^2.  One exp, K-1 VPU muls.
        e = jnp.exp(-l2 * inv_bw_ref[kernel_num - 1])   # widest bandwidth first
        ksum = e
        for _ in range(kernel_num - 1):
            e = e * e
            ksum = ksum + e
    else:
        # generic fallback (still scalar multiply, not a full-matrix divide)
        ksum = jnp.zeros_like(l2)
        for k in range(kernel_num):
            ksum = ksum + jnp.exp(-l2 * inv_bw_ref[k])

    # Sign-weighted reduction replaces the xx/yy/xy/yx quadrant slices:
    # partial[q] = sum_p s_p * K_pq   (vec-mat on the MXU, no cross-lane reduce)
    partial = lax.dot_general(s_row_ref[...], ksum, (((0,), (0,)), ((), ())),
                              preferred_element_type=jnp.float32)     # (1, T)

    # Off-diagonal tiles of the symmetric kernel matrix are counted twice.
    scale = jnp.where(i == j, 1.0, 2.0).astype(jnp.float32)
    out_ref[...] = (scale * partial * s_col_ref[...])[None]           # (1, 1, T)


def mmd_loss(x, label=None, genre_label=None, *, embedding_dim,
             kernel_mul=2.0, kernel_num=5, fix_sigma=None, tile=None):
    """JAX wrapper reproducing LossFunction.forward (label/genre_label unused)."""
    x = jnp.asarray(x, jnp.float32)
    batch = int(x.shape[0])
    assert batch % 2 == 0, "batch must be even (n_src == n_tgt)"

    # Flatten; the MMD expression is permutation-invariant, so no strided
    # gather/concat — source/target membership becomes a +/-1 sign per row.
    total = x.reshape(-1, embedding_dim)                  # (N, D)
    n_total = int(total.shape[0])
    assert n_total % batch == 0
    rows_per = n_total // batch                           # rows per batch element
    n = n_total // 2                                      # n_src == n_tgt

    batch_of_row = jnp.arange(n_total) // rows_per
    sign = jnp.where(batch_of_row % 2 == 0, 1.0, -1.0).astype(jnp.float32)

    # Row stats + closed-form sum of the full L2 matrix:
    #   sum_ij l2 = 2*N*sum_i ||t_i||^2 - 2*||sum_i t_i||^2
    rnorm = jnp.sum(total * total, axis=1)                # (N,)
    if fix_sigma:
        bandwidth = jnp.float32(fix_sigma)
    else:
        col_sum = jnp.sum(total, axis=0)
        l2_sum = 2.0 * n_total * jnp.sum(rnorm) - 2.0 * jnp.sum(col_sum * col_sum)
        bandwidth = l2_sum / float(n_total * n_total - n_total)
    bandwidth = bandwidth / (kernel_mul ** (kernel_num // 2))
    inv_bw = (1.0 / (bandwidth *
                     (kernel_mul ** jnp.arange(kernel_num, dtype=jnp.float32)))
              ).astype(jnp.float32)                       # (kernel_num,)

    # Pad lanes (embedding dim) to 128; rows to a 128-multiple tile.
    # Padded rows are all-zero with sign 0 -> contribute exactly 0 to the loss.
    d_pad = _round_up(embedding_dim, 128)
    if tile is None:
        tile = min(512, _round_up(n_total, 128))
        # keep double-buffered row/col tiles + (T,T) temporaries well under the
        # scoped-VMEM default (32 MiB, incl. v7x whose physical VMEM is 64 MiB)
        while tile > 128 and (4 * tile * d_pad + 4 * tile * tile) * 4 > (24 << 20):
            tile //= 2
    assert tile % 128 == 0
    n_pad = _round_up(n_total, tile)
    n_tiles = n_pad // tile

    total_p = jnp.pad(total, ((0, n_pad - n_total), (0, d_pad - embedding_dim)))
    sign_p = jnp.pad(sign, (0, n_pad - n_total))
    rnorm_p = jnp.pad(rnorm, (0, n_pad - n_total))

    s_row = sign_p.reshape(n_pad, 1)
    s_col = sign_p.reshape(1, n_pad)
    rn_row = rnorm_p.reshape(n_pad, 1)
    rn_col = rnorm_p.reshape(1, n_pad)

    # Upper-triangle tile pairs (i outer so the row tile stays resident within
    # a row group); off-diagonal tiles are weighted 2x inside the kernel.
    pairs = [(i, j) for i in range(n_tiles) for j in range(i, n_tiles)]
    i_of = jnp.array([p[0] for p in pairs], dtype=jnp.int32)
    j_of = jnp.array([p[1] for p in pairs], dtype=jnp.int32)
    n_steps = len(pairs)

    kernel = functools.partial(_mmd_kernel,
                               kernel_num=int(kernel_num),
                               kernel_mul=float(kernel_mul))

    out = pl.pallas_call(
        kernel,
        out_shape=jax.ShapeDtypeStruct((n_steps, 1, tile), jnp.float32),
        grid_spec=pltpu.PrefetchScalarGridSpec(
            num_scalar_prefetch=2,            # i_of, j_of -> SMEM, feed index_maps
            grid=(n_steps,),
            in_specs=[
                pl.BlockSpec(memory_space=pltpu.MemorySpace.SMEM),          # inv_bw
                pl.BlockSpec((tile, d_pad), lambda s, io, jo: (io[s], 0)),  # row tile
                pl.BlockSpec((tile, d_pad), lambda s, io, jo: (jo[s], 0)),  # col tile
                pl.BlockSpec((tile, 1), lambda s, io, jo: (io[s], 0)),      # rn_row
                pl.BlockSpec((1, tile), lambda s, io, jo: (0, jo[s])),      # rn_col
                pl.BlockSpec((tile, 1), lambda s, io, jo: (io[s], 0)),      # s_row
                pl.BlockSpec((1, tile), lambda s, io, jo: (0, jo[s])),      # s_col
            ],
            out_specs=pl.BlockSpec((1, 1, tile), lambda s, io, jo: (s, 0, 0)),
        ),
        compiler_params=pltpu.CompilerParams(
            dimension_semantics=("parallel",)),    # independent steps -> megacore on v7x
    )(i_of, j_of, inv_bw, total_p, total_p, rn_row, rn_col, s_row, s_col)

    return jnp.sum(out) / float(n * n)


def _mmd_loss_ref(x, *, embedding_dim, kernel_mul=2.0, kernel_num=5):
    """Pure-JAX reference mirroring the PyTorch code exactly."""
    source = x[0::2].reshape(-1, embedding_dim)
    target = x[1::2].reshape(-1, embedding_dim)
    total = jnp.concatenate([source, target], axis=0).astype(jnp.float32)
    n_samples = total.shape[0]
    diff = total[None, :, :] - total[:, None, :]
    l2 = jnp.sum(diff * diff, axis=2)
    bandwidth = jnp.sum(l2) / (n_samples ** 2 - n_samples)
    bandwidth = bandwidth / (kernel_mul ** (kernel_num // 2))
    kernels = sum(jnp.exp(-l2 / (bandwidth * kernel_mul ** i))
                  for i in range(kernel_num))
    n = source.shape[0]
    xx = kernels[:n, :n]
    yy = kernels[n:, n:]
    xy = kernels[:n, n:]
    yx = kernels[n:, :n]
    return jnp.mean(xx + yy - xy - yx)


if __name__ == "__main__":
    embedding_dim = 32
    key = jax.random.PRNGKey(0)

    # Case 1: batch of 8 embeddings (even rows -> source, odd rows -> target).
    batch = 8
    x = jax.random.normal(key, (batch, embedding_dim), dtype=jnp.float32)
    label = jnp.zeros((batch,), dtype=jnp.int32)         # unused, as in PyTorch
    genre_label = jnp.zeros((batch,), dtype=jnp.int32)   # unused, as in PyTorch

    loss = mmd_loss(x, label, genre_label, embedding_dim=embedding_dim,
                    kernel_mul=2.0, kernel_num=5)
    loss = jax.block_until_ready(loss)
    ref = _mmd_loss_ref(x, embedding_dim=embedding_dim,
                        kernel_mul=2.0, kernel_num=5)
    assert jnp.allclose(loss, ref, rtol=1e-4, atol=1e-5), (loss, ref)

    # Case 2: (B, T, D) input -> 320 rows, forced tile=128 to exercise the
    # triangular multi-tile grid path.  Slightly looser rtol: closed-form
    # bandwidth + Gram-identity L2 differ from the reference in low-order bits.
    x2 = jax.random.normal(jax.random.PRNGKey(1), (4, 80, embedding_dim),
                           dtype=jnp.float32)
    loss2 = jax.block_until_ready(
        mmd_loss(x2, embedding_dim=embedding_dim, tile=128))
    ref2 = _mmd_loss_ref(x2, embedding_dim=embedding_dim)
    assert jnp.allclose(loss2, ref2, rtol=1e-3, atol=1e-5), (loss2, ref2)

    print("KERNEL_OK")
</pallas_src>

<mosaic_0001>
module attributes {stable_mosaic.version = 11 : i64} {
  func.func @_mmd_kernel(%arg0: i32, %arg1: memref<1xi32, #tpu.memory_space<smem>>, %arg2: memref<1xi32, #tpu.memory_space<smem>>, %arg3: memref<5xf32, #tpu.memory_space<smem>>, %arg4: memref<128x128xf32, #tpu.memory_space<vmem>>, %arg5: memref<128x128xf32, #tpu.memory_space<vmem>>, %arg6: memref<128x1xf32, #tpu.memory_space<vmem>>, %arg7: memref<1x128xf32, #tpu.memory_space<vmem>>, %arg8: memref<128x1xf32, #tpu.memory_space<vmem>>, %arg9: memref<1x128xf32, #tpu.memory_space<vmem>>, %arg10: memref<1x1x128xf32, #tpu.memory_space<vmem>>) attributes {dimension_semantics = [#tpu.dimension_semantics<parallel>], iteration_bounds = array<i64: 1>, scalar_prefetch = 2 : i64, scratch_operands = 0 : i64, tpu.core_type = #tpu.core_type<tc>, window_params = [{transform_indices = @transform_0, window_bounds = array<i64: 5>}, {transform_indices = @transform_1, window_bounds = array<i64: 128, 128>}, {transform_indices = @transform_2, window_bounds = array<i64: 128, 128>}, {transform_indices = @transform_3, window_bounds = array<i64: 128, 1>}, {transform_indices = @transform_4, window_bounds = array<i64: 1, 128>}, {transform_indices = @transform_5, window_bounds = array<i64: 128, 1>}, {transform_indices = @transform_6, window_bounds = array<i64: 1, 128>}, {transform_indices = @transform_7, window_bounds = array<i64: 1, 1, 128>}]} {
    %0 = arith.index_cast %arg0 : i32 to index
    %1 = memref.load %arg1[%0] : memref<1xi32, #tpu.memory_space<smem>>
    %2 = arith.index_cast %arg0 : i32 to index
    %3 = memref.load %arg2[%2] : memref<1xi32, #tpu.memory_space<smem>>
    %c0 = arith.constant 0 : index
    %c0_0 = arith.constant 0 : index
    %4 = vector.load %arg4[%c0, %c0_0] : memref<128x128xf32, #tpu.memory_space<vmem>>, vector<128x128xf32>
    %c0_1 = arith.constant 0 : index
    %c0_2 = arith.constant 0 : index
    %5 = vector.load %arg5[%c0_1, %c0_2] : memref<128x128xf32, #tpu.memory_space<vmem>>, vector<128x128xf32>
    %cst = arith.constant dense<0.000000e+00> : vector<128x128xf32>
    %6 = tpu.matmul %4, %5, %cst {dimension_numbers = #tpu.dot_dimension_numbers<[1], [1], [0], [0], [0, 0, 1, 0], [], []>} : vector<128x128xf32>, vector<128x128xf32>, vector<128x128xf32> -> vector<128x128xf32>
    %c0_3 = arith.constant 0 : index
    %c0_4 = arith.constant 0 : index
    %7 = vector.load %arg6[%c0_3, %c0_4] : memref<128x1xf32, #tpu.memory_space<vmem>>, vector<128x1xf32>
    %c0_5 = arith.constant 0 : index
    %c0_6 = arith.constant 0 : index
    %8 = vector.load %arg7[%c0_5, %c0_6] : memref<1x128xf32, #tpu.memory_space<vmem>>, vector<1x128xf32>
    %9 = vector.broadcast %7 : vector<128x1xf32> to vector<128x128xf32>
    %10 = vector.broadcast %8 : vector<1x128xf32> to vector<128x128xf32>
    %11 = arith.addf %9, %10 : vector<128x128xf32>
    %cst_7 = arith.constant 2.000000e+00 : f32
    %12 = vector.broadcast %cst_7 : f32 to vector<128x128xf32>
    %13 = arith.mulf %12, %6 : vector<128x128xf32>
    %14 = arith.subf %11, %13 : vector<128x128xf32>
    %cst_8 = arith.constant 0.000000e+00 : f32
    %15 = vector.broadcast %cst_8 : f32 to vector<128x128xf32>
    %16 = arith.maximumf %14, %15 : vector<128x128xf32>
    %cst_9 = arith.constant 0.000000e+00 : f32
    %17 = vector.broadcast %cst_9 : f32 to vector<128x128xf32>
    %18 = arith.subf %17, %16 : vector<128x128xf32>
    %c4 = arith.constant 4 : index
    %19 = memref.load %arg3[%c4] : memref<5xf32, #tpu.memory_space<smem>>
    %20 = vector.broadcast %19 : f32 to vector<128x128xf32>
    %21 = arith.mulf %18, %20 : vector<128x128xf32>
    %22 = math.exp %21 : vector<128x128xf32>
    %23 = arith.mulf %22, %22 : vector<128x128xf32>
    %24 = arith.addf %22, %23 : vector<128x128xf32>
    %25 = arith.mulf %23, %23 : vector<128x128xf32>
    %26 = arith.addf %24, %25 : vector<128x128xf32>
    %27 = arith.mulf %25, %25 : vector<128x128xf32>
    %28 = arith.addf %26, %27 : vector<128x128xf32>
    %29 = arith.mulf %27, %27 : vector<128x128xf32>
    %30 = arith.addf %28, %29 : vector<128x128xf32>
    %c0_10 = arith.constant 0 : index
    %c0_11 = arith.constant 0 : index
    %31 = vector.load %arg8[%c0_10, %c0_11] : memref<128x1xf32, #tpu.memory_space<vmem>>, vector<128x1xf32>
    %cst_12 = arith.constant dense<0.000000e+00> : vector<1x128xf32>
    %32 = tpu.matmul %31, %30, %cst_12 {dimension_numbers = #tpu.dot_dimension_numbers<[0], [0], [1], [1], [0, 1, 1, 1], [], []>} : vector<128x1xf32>, vector<128x128xf32>, vector<1x128xf32> -> vector<1x128xf32>
    %33 = arith.cmpi eq, %1, %3 : i32
    %cst_13 = arith.constant 1.000000e+00 : f32
    %cst_14 = arith.constant 2.000000e+00 : f32
    %34 = arith.select %33, %cst_13, %cst_14 : f32
    %35 = vector.broadcast %34 : f32 to vector<1x128xf32>
    %36 = arith.mulf %35, %32 : vector<1x128xf32>
    %c0_15 = arith.constant 0 : index
    %c0_16 = arith.constant 0 : index
    %37 = vector.load %arg9[%c0_15, %c0_16] : memref<1x128xf32, #tpu.memory_space<vmem>>, vector<1x128xf32>
    %38 = arith.mulf %36, %37 : vector<1x128xf32>
    %39 = vector.shape_cast %38 : vector<1x128xf32> to vector<1x1x128xf32>
    %c0_17 = arith.constant 0 : index
    %c0_18 = arith.constant 0 : index
    %c0_19 = arith.constant 0 : index
    %40 = vector.load %arg10[%c0_17, %c0_18, %c0_19] : memref<1x1x128xf32, #tpu.memory_space<vmem>>, vector<1x1x128xf32>
    tpu.vector_store %arg10[%c0_17, %c0_18, %c0_19], %39 {strides = array<i32>} : memref<1x1x128xf32, #tpu.memory_space<vmem>>, vector<1x1x128xf32>,
    return
  }
  func.func @transform_0(%arg0: i32, %arg1: memref<1xi32, #tpu.memory_space<smem>>, %arg2: memref<1xi32, #tpu.memory_space<smem>>) -> i32 {
    %c0_i32 = arith.constant 0 : i32
    %c0_i32_0 = arith.constant 0 : i32
    return %c0_i32 : i32
  }
  func.func @transform_1(%arg0: i32, %arg1: memref<1xi32, #tpu.memory_space<smem>>, %arg2: memref<1xi32, #tpu.memory_space<smem>>) -> (i32, i32) {
    %0 = arith.index_cast %arg0 : i32 to index
    %1 = memref.load %arg1[%0] : memref<1xi32, #tpu.memory_space<smem>>
    %c0_i32 = arith.constant 0 : i32
    %c0_i32_0 = arith.constant 0 : i32
    return %1, %c0_i32 : i32, i32
  }
  func.func @transform_2(%arg0: i32, %arg1: memref<1xi32, #tpu.memory_space<smem>>, %arg2: memref<1xi32, #tpu.memory_space<smem>>) -> (i32, i32) {
    %0 = arith.index_cast %arg0 : i32 to index
    %1 = memref.load %arg2[%0] : memref<1xi32, #tpu.memory_space<smem>>
    %c0_i32 = arith.constant 0 : i32
    %c0_i32_0 = arith.constant 0 : i32
    return %1, %c0_i32 : i32, i32
  }
  func.func @transform_3(%arg0: i32, %arg1: memref<1xi32, #tpu.memory_space<smem>>, %arg2: memref<1xi32, #tpu.memory_space<smem>>) -> (i32, i32) {
    %0 = arith.index_cast %arg0 : i32 to index
    %1 = memref.load %arg1[%0] : memref<1xi32, #tpu.memory_space<smem>>
    %c0_i32 = arith.constant 0 : i32
    %c0_i32_0 = arith.constant 0 : i32
    return %1, %c0_i32 : i32, i32
  }
  func.func @transform_4(%arg0: i32, %arg1: memref<1xi32, #tpu.memory_space<smem>>, %arg2: memref<1xi32, #tpu.memory_space<smem>>) -> (i32, i32) {
    %0 = arith.index_cast %arg0 : i32 to index
    %1 = memref.load %arg2[%0] : memref<1xi32, #tpu.memory_space<smem>>
    %c0_i32 = arith.constant 0 : i32
    %c0_i32_0 = arith.constant 0 : i32
    return %c0_i32, %1 : i32, i32
  }
  func.func @transform_5(%arg0: i32, %arg1: memref<1xi32, #tpu.memory_space<smem>>, %arg2: memref<1xi32, #tpu.memory_space<smem>>) -> (i32, i32) {
    %0 = arith.index_cast %arg0 : i32 to index
    %1 = memref.load %arg1[%0] : memref<1xi32, #tpu.memory_space<smem>>
    %c0_i32 = arith.constant 0 : i32
    %c0_i32_0 = arith.constant 0 : i32
    return %1, %c0_i32 : i32, i32
  }
  func.func @transform_6(%arg0: i32, %arg1: memref<1xi32, #tpu.memory_space<smem>>, %arg2: memref<1xi32, #tpu.memory_space<smem>>) -> (i32, i32) {
    %0 = arith.index_cast %arg0 : i32 to index
    %1 = memref.load %arg2[%0] : memref<1xi32, #tpu.memory_space<smem>>
    %c0_i32 = arith.constant 0 : i32
    %c0_i32_0 = arith.constant 0 : i32
    return %c0_i32, %1 : i32, i32
  }
  func.func @transform_7(%arg0: i32, %arg1: memref<1xi32, #tpu.memory_space<smem>>, %arg2: memref<1xi32, #tpu.memory_space<smem>>) -> (i32, i32, i32) {
    %c0_i32 = arith.constant 0 : i32
    %c0_i32_0 = arith.constant 0 : i32
    %c0_i32_1 = arith.constant 0 : i32
    return %arg0, %c0_i32, %c0_i32_0 : i32, i32, i32
  }
}

</mosaic_0001>

<bundles_post_ra>
// kernel: tpu_custom_call.1
= control target key start
LH: loop header
LB: loop body
LE: loop exit
PB: predicated region body
PF: predicated region fallthrough
CT: control target
= control target key end

     0   :  { %16 = vsyncpa [#allocation7], 0  ;;  %s1352_s0 = inlined_call_operand.<no memory space> [shape: s32[1], index: 0, kind: input, shape index: {}]   ;;  %s1353_s1 = inlined_call_operand.<no memory space> [shape: s32[1], index: 1, kind: input, shape index: {}]   ;;  %s1354_s2 = inlined_call_operand.vmem [shape: f32[5], index: 2, kind: input, shape index: {}]   ;;  %s1355_s3 = inlined_call_operand.vmem [shape: f32[128,128], index: 3, kind: input, shape index: {}]   ;;  %s1356_s4 = inlined_call_operand.vmem [shape: f32[128,128], index: 4, kind: input, shape index: {}]   ;;  %s1357_s5 = inlined_call_operand.vmem [shape: f32[128,1], index: 5, kind: input, shape index: {}]   ;;  %s1358_s6 = inlined_call_operand.vmem [shape: f32[1,128], index: 6, kind: input, shape index: {}]   ;;  %s1359_s7 = inlined_call_operand.vmem [shape: f32[128,1], index: 7, kind: input, shape index: {}]   ;;  %s1360_s8 = inlined_call_operand.vmem [shape: f32[1,128], index: 8, kind: input, shape index: {}]   ;;  %s1361_s9 = inlined_call_operand.hbm [shape: f32[1,1,128], index: 9, kind: output, shape index: {}]  }
   0x1   :  { %17 = vsyncpa [#allocation6], 0  ;;  %s24_s11 = sshll.u32 %s1354_s2, 4  ;;  %s25_s11 = int_to_ptr.vmem [resolvable:$true] %s24_s11 }
   0x2   :  { %s1059_s12 = scalar_lea.vmem %s25_s11, 16  ;;  %p1064_p1 = scmp.lt.s32.totalorder %s25_s11, %s25_s11 }
   0x3   :  { %p1060_p0 = scmp.ne.s32.totalorder %s25_s11, %s1059_s12  ;;  %p1065_p2 = scmp.lt.s32.totalorder %s1059_s12, %s1059_s12 }
   0x5   :  { %p1066_p3 = por %p1065_p2, %p1064_p1 }
   0x7   :  { %p1067_p4 = pnand %p1066_p3, %p1060_p0 }
   0x9   :  { %1070 = shalt.err (!%p1067_p4)
}
   0xa   :  { %s1095_s13 = smov [#allocation5]  }
   0xb   :  { %27 = dma.vmem_to_smem %s25_s11, 16, %s1095_s13, [#allocation7]  }
   0xc   :  { %1091 = dma.done.wait [#allocation7], 16  }
   0xd   :  { %1092 = vsyncadd [#allocation7], 4294967280 }
   0xe   :  { %85 = sfence }
   0xf   :  { %s872_s16 = sshll.u32 %s1353_s1, 4  ;;  %s870_s2 = sshll.u32 %s1352_s0, 4  ;;  %v1096_v0 = vmov 0   ;;  %vm1098_vm0 = vmmov 0  }
  0x10   :  { %p128_p5 = scmp.lt.s32.totalorder %s872_s16, 15  ;;  %p120_p6 = scmp.lt.s32.totalorder %s870_s2, 15  ;;  %1025 = vset.pattern.permute.xlu0 %v1096_v0  ;;  %1026 = vset.pattern.permute.xlu1 %v1096_v0 }
  0x11   :  { %p143_p7 = scmp.lt.s32.totalorder %s1353_s1, 0  ;;  %p818_p8 = scmp.eq.s32.totalorder %s1352_s0, %s1353_s1 }
  0x12   :  { %s1363_s16 = smov (!%p128_p5, %s872_s16), 15  ;;  %s1365_s2 = smov (!%p120_p6, %s870_s2), 15 }
  0x13   :  { %s873_s19 = sshll.u32 %s1363_s16, 3  ;;  %s1164_s23 = sshll.u32 %s1365_s2, 3 }
  0x14   :  { %s1162_s22 = scalar_lea.vmem %s1356_s4, %s873_s19  ;;  %s1172_s26 = scalar_lea.vmem %s1355_s3, %s1164_s23 }
  0x15   :  { %v193_v1 = vld [vmem:[%s1162_s22 + $0x78] sm:$0xff]  ;;  %v192_v2 = vld [vmem:[%s1162_s22 + $0x70] sm:$0xff]  ;;  %v191_v3 = vld [vmem:[%s1162_s22 + $0x68] sm:$0xff]  ;;  %s1180_s28 = scalar_lea.vmem %s1357_s5, %s1164_s23  ;;  %s1217_s29 = scalar_lea.vmem %s1359_s7, %s1164_s23 }
  0x16   :  { %929 = vmatprep.subr.mxu0 %v193_v1  ;;  %v162_v4 = vld [vmem:[%s1172_s26] sm:$0xff]  ;;  %v354_v6 = vld [vmem:[%s1180_s28 + $0x78] sm:$0xff]  ;;  %v352_v7 = vld [vmem:[%s1180_s28 + $0x68] sm:$0xff]  ;;  %s1256_s12 = scalar_select %p143_p7, %s1353_s1, 0 }
  0x17   :  { %930 = vmatpush3.xpose.msra.mxu0 %v193_v1  ;;  %961 = vmatprep.mubr.f32.mxu0 %v162_v4  ;;  %v190_v5 = vld [vmem:[%s1162_s22 + $0x60] sm:$0xff]  ;;  %v189_v8 = vld [vmem:[%s1162_s22 + $0x58] sm:$0xff]  ;;  %v353_v9 = vld [vmem:[%s1180_s28 + $0x70] sm:$0xff]  ;;  %v1097_v1 = vmov 0.0   ;;  %s879_s16 = sld [smem:[#allocation5 + $0x4]]  ;;  %s1099_s23 = smov [#allocation8]  }
  0x18   :  { %931 = vmatprep.subr.mxu0 %v192_v2  ;;  %433 = vperm.xlu0 %1025, %v354_v6   ;;  %v351_v10 = vld [vmem:[%s1180_s28 + $0x60] sm:$0xff]  ;;  %v188_v11 = vld [vmem:[%s1162_s22 + $0x50] sm:$0xff]  ;;  %v350_v12 = vld [vmem:[%s1180_s28 + $0x58] sm:$0xff]  ;;  %s145_s15 = scalar_lea.vmem %s1358_s6, %s1256_s12  ;;  %s831_s24 = sshll.u32 %s1099_s23, 4  ;;  %s832_s24 = int_to_ptr.vmem [resolvable:$true] %s831_s24 }
  0x19   :  { %423 = vperm.xlu1 %1026, %v352_v7   ;;  %v349_v13 = vld [vmem:[%s1180_s28 + $0x50] sm:$0xff]  ;;  %v187_v14 = vld [vmem:[%s1162_s22 + $0x48] sm:$0xff]  ;;  %v347_v16 = vld [vmem:[%s1180_s28 + $0x40] sm:$0xff]  ;;  %985 = vmatprep.subr.mxu1 %v1097_v1  ;;  %s819_s19 = scalar_select %p818_p8, 1.0, 2.0 }
  0x1a   :  { %v348_v15 = vld [vmem:[%s1180_s28 + $0x48] sm:$0xff]  ;;  %v186_v17 = vld [vmem:[%s1162_s22 + $0x40] sm:$0xff]  ;;  %v346_v18 = vld [vmem:[%s1180_s28 + $0x38] sm:$0xff]  ;;  %1017 = vmatprep.mubr.msk.f32.mxu1 %vm1098_vm0, %v1097_v1  ;;  %s1071_s25 = scalar_lea.vmem %s832_s24, 16  ;;  %p1076_p10 = scmp.lt.s32.totalorder %s832_s24, %s832_s24 }
  0x1b   :  { %932 = vmatpush3.xpose.msra.mxu0 %v192_v2  ;;  %v345_v19 = vld [vmem:[%s1180_s28 + $0x30] sm:$0xff]  ;;  %v185_v20 = vld [vmem:[%s1162_s22 + $0x38] sm:$0xff]  ;;  %v344_v21 = vld [vmem:[%s1180_s28 + $0x28] sm:$0xff]  ;;  %p1072_p9 = scmp.ne.s32.totalorder %s832_s24, %s1071_s25 }
  0x1c   :  { %933 = vmatprep.subr.mxu0 %v191_v3  ;;  %428 = vperm.xlu0 %1025, %v353_v9   ;;  %v343_v22 = vld [vmem:[%s1180_s28 + $0x20] sm:$0xff]  ;;  %v184_v23 = vld [vmem:[%s1162_s22 + $0x30] sm:$0xff]  ;;  %v342_v24 = vld [vmem:[%s1180_s28 + $0x18] sm:$0xff] }
  0x1d   :  { %418 = vperm.xlu1 %1026, %v351_v10   ;;  %v341_v25 = vld [vmem:[%s1180_s28 + $0x10] sm:$0xff]  ;;  %v183_v26 = vld [vmem:[%s1162_s22 + $0x28] sm:$0xff]  ;;  %v339_v28 = vld [vmem:[%s1180_s28] sm:$0xff] }
  0x1e   :  { %v340_v27 = vld [vmem:[%s1180_s28 + $0x8] sm:$0xff]  ;;  %v182_v29 = vld [vmem:[%s1162_s22 + $0x20] sm:$0xff]  ;;  %v181_v30 = vld [vmem:[%s1162_s22 + $0x18] sm:$0xff] }
  0x1f   :  { %934 = vmatpush3.xpose.msra.mxu0 %v191_v3  ;;  %v180_v31 = vld [vmem:[%s1162_s22 + $0x10] sm:$0xff]  ;;  %v179_v32 = vld [vmem:[%s1162_s22 + $0x8] sm:$0xff]  ;;  %v178_v33 = vld [vmem:[%s1162_s22] sm:$0xff]  ;;  %s158_s22 = scalar_lea.vmem %s1360_s8, %s1256_s12 }
  0x20   :  { %935 = vmatprep.subr.mxu0 %v190_v5  ;;  %413 = vperm.xlu0 %1025, %v350_v12   ;;  %v163_v34 = vld [vmem:[%s1172_s26 + $0x8] sm:$0xff]  ;;  %v164_v35 = vld [vmem:[%s1172_s26 + $0x10] sm:$0xff]  ;;  %v165_v36 = vld [vmem:[%s1172_s26 + $0x18] sm:$0xff] }
  0x21   :  { %408 = vperm.xlu1 %1026, %v349_v13   ;;  %v700_v37 = vld [vmem:[%s1217_s29] sm:$0xff]  ;;  %v167_v39 = vld [vmem:[%s1172_s26 + $0x28] sm:$0xff]  ;;  %v168_v41 = vld [vmem:[%s1172_s26 + $0x30] sm:$0xff] }
  0x22   :  { %v166_v38 = vld [vmem:[%s1172_s26 + $0x20] sm:$0xff]  ;;  %v701_v40 = vld [vmem:[%s1217_s29 + $0x8] sm:$0xff]  ;;  %v169_v42 = vld [vmem:[%s1172_s26 + $0x38] sm:$0xff] }
  0x23   :  { %936 = vmatpush3.xpose.msra.mxu0 %v190_v5  ;;  %v702_v43 = vld [vmem:[%s1217_s29 + $0x10] sm:$0xff]  ;;  %v170_v44 = vld [vmem:[%s1172_s26 + $0x40] sm:$0xff]  ;;  %v171_v45 = vld [vmem:[%s1172_s26 + $0x48] sm:$0xff] }
  0x24   :  { %937 = vmatprep.subr.mxu0 %v189_v8  ;;  %403 = vperm.xlu0 %1025, %v348_v15   ;;  %v703_v46 = vld [vmem:[%s1217_s29 + $0x18] sm:$0xff]  ;;  %v172_v47 = vld [vmem:[%s1172_s26 + $0x50] sm:$0xff]  ;;  %v704_v49 = vld [vmem:[%s1217_s29 + $0x20] sm:$0xff] }
  0x25   :  { %398 = vperm.xlu1 %1026, %v347_v16   ;;  %v173_v48 = vld [vmem:[%s1172_s26 + $0x58] sm:$0xff]  ;;  %v174_v50 = vld [vmem:[%s1172_s26 + $0x60] sm:$0xff]  ;;  %v175_v51 = vld [vmem:[%s1172_s26 + $0x68] sm:$0xff] }
  0x26   :  { %v705_v52 = vld [vmem:[%s1217_s29 + $0x28] sm:$0xff]  ;;  %v176_v53 = vld [vmem:[%s1172_s26 + $0x70] sm:$0xff]  ;;  %v177_v54 = vld [vmem:[%s1172_s26 + $0x78] sm:$0xff]  ;;  %s1075_s26 = scalar_lea.vmem %s832_s24, 32 }
  0x27   :  { %938 = vmatpush3.xpose.msra.mxu0 %v189_v8  ;;  %v706_v55 = vld [vmem:[%s1217_s29 + $0x30] sm:$0xff]  ;;  %v707_v56 = vld [vmem:[%s1217_s29 + $0x38] sm:$0xff]  ;;  %v708_v57 = vld [vmem:[%s1217_s29 + $0x40] sm:$0xff]  ;;  %p1077_p11 = scmp.lt.s32.totalorder %s1075_s26, %s1071_s25 }
  0x28   :  { %939 = vmatprep.subr.mxu0 %v188_v11  ;;  %393 = vperm.xlu0 %1025, %v346_v18   ;;  %v709_v58 = vld [vmem:[%s1217_s29 + $0x48] sm:$0xff]  ;;  %v710_v59 = vld [vmem:[%s1217_s29 + $0x50] sm:$0xff]  ;;  %v711_v60 = vld [vmem:[%s1217_s29 + $0x58] sm:$0xff] }
  0x29   :  { %388 = vperm.xlu1 %1026, %v345_v19   ;;  %v712_v61 = vld [vmem:[%s1217_s29 + $0x60] sm:$0xff]  ;;  %v713_v62 = vld [vmem:[%s1217_s29 + $0x68] sm:$0xff]  ;;  %v714_v63 = vld [vmem:[%s1217_s29 + $0x70] sm:$0xff]  ;;  %p1078_p12 = por %p1077_p11, %p1076_p10 }
  0x2a   :  { %v715_v0 = vld [vmem:[%s1217_s29 + $0x78] sm:$0xff] }
  0x2b   :  { %940 = vmatpush3.xpose.msra.mxu0 %v188_v11  ;;  %p1079_p13 = pnand %p1078_p12, %p1072_p9 }
  0x2c   :  { %941 = vmatprep.subr.mxu0 %v187_v14  ;;  %383 = vperm.xlu0 %1025, %v344_v21   ;;  %v878_v21 = vld [vmem:[%s145_s15] ss:$0 sm:$0xff] }
  0x2d   :  { %378 = vperm.xlu1 %1026, %v343_v22  }
  0x2f   :  { %942 = vmatpush3.xpose.msra.mxu0 %v187_v14 }
  0x30   :  { %943 = vmatprep.subr.mxu0 %v186_v17  ;;  %373 = vperm.xlu0 %1025, %v342_v24  }
  0x31   :  { %368 = vperm.xlu1 %1026, %v341_v25  }
  0x33   :  { %944 = vmatpush3.xpose.msra.mxu0 %v186_v17 }
  0x34   :  { %945 = vmatprep.subr.mxu0 %v185_v20  ;;  %363 = vperm.xlu0 %1025, %v340_v27  }
  0x35   :  { %358 = vperm.xlu1 %1026, %v339_v28  }
  0x37   :  { %946 = vmatpush3.xpose.msra.mxu0 %v185_v20 }
  0x38   :  { %947 = vmatprep.subr.mxu0 %v184_v23 }
  0x3b   :  { %948 = vmatpush3.xpose.msra.mxu0 %v184_v23 }
  0x3c   :  { %949 = vmatprep.subr.mxu0 %v183_v26 }
  0x3f   :  { %950 = vmatpush3.xpose.msra.mxu0 %v183_v26 }
  0x40   :  { %951 = vmatprep.subr.mxu0 %v182_v29 }
  0x43   :  { %952 = vmatpush3.xpose.msra.mxu0 %v182_v29 }
  0x44   :  { %953 = vmatprep.subr.mxu0 %v181_v30 }
  0x47   :  { %954 = vmatpush3.xpose.msra.mxu0 %v181_v30 }
  0x48   :  { %955 = vmatprep.subr.mxu0 %v180_v31 }
  0x4b   :  { %956 = vmatpush3.xpose.msra.mxu0 %v180_v31 }
  0x4c   :  { %957 = vmatprep.subr.mxu0 %v179_v32 }
  0x4f   :  { %958 = vmatpush3.xpose.msra.mxu0 %v179_v32 }
  0x50   :  { %959 = vmatprep.subr.mxu0 %v178_v33 }
  0x52   :  { %716 = vxpose.xlu0.b32.start [1/16] (narrow) %v700_v37, 8 }
  0x53   :  { %960 = vmatpush3.xpose.msra.mxu0 %v178_v33 }
  0x56   :  { %962 = vmatmul.mubr.f32.vlgmr.msra.gmra.mxu0 %v163_v34  ;;  %717 = vxpose.xlu0.b32.cont [2/16] (narrow) %v701_v40, 8 }
  0x57   :  { %964 = vmatprep.mubr.f32.mxu0 %v164_v35 }
  0x5a   :  { %965 = vmatmul.mubr.f32.gmra.mxu0 %v165_v36  ;;  %718 = vxpose.xlu0.b32.cont [3/16] (narrow) %v702_v43, 8  ;;  %v1268_v43 = vstv %s879_s16 }
  0x5b   :  { %967 = vmatprep.mubr.f32.mxu0 %v166_v38 }
  0x5e   :  { %968 = vmatmul.mubr.f32.gmra.mxu0 %v167_v39  ;;  %719 = vxpose.xlu0.b32.cont [4/16] (narrow) %v703_v46, 8 }
  0x5f   :  { %970 = vmatprep.mubr.f32.mxu0 %v168_v41 }
  0x62   :  { %971 = vmatmul.mubr.f32.gmra.mxu0 %v169_v42  ;;  %720 = vxpose.xlu0.b32.cont [5/16] (narrow) %v704_v49, 8 }
  0x63   :  { %973 = vmatprep.mubr.f32.mxu0 %v170_v44 }
  0x66   :  { %974 = vmatmul.mubr.f32.gmra.mxu0 %v171_v45  ;;  %721 = vxpose.xlu0.b32.cont [6/16] (narrow) %v705_v52, 8 }
  0x67   :  { %976 = vmatprep.mubr.f32.mxu0 %v172_v47 }
  0x6a   :  { %977 = vmatmul.mubr.f32.gmra.mxu0 %v173_v48  ;;  %722 = vxpose.xlu0.b32.cont [7/16] (narrow) %v706_v55, 8 }
  0x6b   :  { %979 = vmatprep.mubr.f32.mxu0 %v174_v50 }
  0x6e   :  { %980 = vmatmul.mubr.f32.gmra.mxu0 %v175_v51  ;;  %723 = vxpose.xlu0.b32.cont [8/16] (narrow) %v707_v56, 8 }
  0x6f   :  { %982 = vmatprep.mubr.f32.mxu0 %v176_v53 }
  0x72   :  { %983 = vmatmul.mubr.f32.gmra.mxu0 %v177_v54  ;;  %724 = vxpose.xlu0.b32.cont [9/16] (narrow) %v708_v57, 8 }
  0x76   :  { %725 = vxpose.xlu0.b32.cont [10/16] (narrow) %v709_v58, 8 }
  0x7a   :  { %726 = vxpose.xlu0.b32.cont [11/16] (narrow) %v710_v59, 8 }
  0x7e   :  { %727 = vxpose.xlu0.b32.cont [12/16] (narrow) %v711_v60, 8 }
  0x82   :  { %728 = vxpose.xlu0.b32.cont [13/16] (narrow) %v712_v61, 8 }
  0x86   :  { %729 = vxpose.xlu0.b32.cont [14/16] (narrow) %v713_v62, 8 }
  0x8a   :  { %730 = vxpose.xlu0.b32.cont [15/16] (narrow) %v714_v63, 8 }
  0x8e   :  { %731 = vxpose.xlu0.b32.end [16/16] (narrow) %v715_v0, 8 }
  0x93   :  { %v434_v2 = vpop.permute.xlu0 %433 }
  0x94   :  { %v424_v3 = vpop.permute.xlu1 %423  ;;  %v1262_v37 = vadd.f32 %v878_v21, %v434_v2 }
  0x95   :  { %v455_v38 = vadd.f32 %v878_v21, %v424_v3 }
  0x97   :  { %v429_v4 = vpop.permute.xlu0 %428 }
  0x98   :  { %v419_v5 = vpop.permute.xlu1 %418  ;;  %v1264_v41 = vadd.f32 %v878_v21, %v429_v4 }
  0x99   :  { %v1266_v42 = vadd.f32 %v878_v21, %v419_v5 }
  0x9b   :  { %v414_v6 = vpop.permute.xlu0 %413 }
  0x9c   :  { %v409_v7 = vpop.permute.xlu1 %408  ;;  %v453_v46 = vadd.f32 %v878_v21, %v414_v6 }
  0x9d   :  { %v452_v47 = vadd.f32 %v878_v21, %v409_v7 }
  0x9f   :  { %v404_v8 = vpop.permute.xlu0 %403 }
  0xa0   :  { %v399_v9 = vpop.permute.xlu1 %398  ;;  %v451_v31 = vadd.f32 %v878_v21, %v404_v8 }
  0xa1   :  { %v450_v39 = vadd.f32 %v878_v21, %v399_v9 }
  0xa3   :  { %v394_v10 = vpop.permute.xlu0 %393 }
  0xa4   :  { %v389_v11 = vpop.permute.xlu1 %388  ;;  %v449_v24 = vadd.f32 %v878_v21, %v394_v10 }
  0xa5   :  { %v448_v50 = vadd.f32 %v878_v21, %v389_v11 }
  0xa7   :  { %v384_v12 = vpop.permute.xlu0 %383 }
  0xa8   :  { %v379_v14 = vpop.permute.xlu1 %378  ;;  %v447_v51 = vadd.f32 %v878_v21, %v384_v12 }
  0xa9   :  { %v446_v5 = vadd.f32 %v878_v21, %v379_v14 }
  0xab   :  { %v374_v16 = vpop.permute.xlu0 %373 }
  0xac   :  { %v369_v19 = vpop.permute.xlu1 %368  ;;  %v1272_v55 = vadd.f32 %v878_v21, %v374_v16 }
  0xad   :  { %v1274_v59 = vadd.f32 %v878_v21, %v369_v19 }
  0xaf   :  { %v364_v22 = vpop.permute.xlu0 %363 }
  0xb0   :  { %v443_v25 = vadd.f32 %v878_v21, %v364_v22  ;;  %v359_v28 = vpop.permute.xlu1 %358 }
  0xb1   :  { %v442_v33 = vadd.f32 %v878_v21, %v359_v28 }
 0x116   :  { %v963_v13 = vpop.f32.mrf.mxu0 }
 0x117   :  { %v459_v26 = vmul.f32 2.0, %v963_v13 }
 0x118   :  { %v260_v15 = vpop.f32.mrf.mxu0 }
 0x119   :  { %v475_v32 = vsub.f32 %v443_v25, %v459_v26  ;;  %v458_v34 = vmul.f32 2.0, %v260_v15 }
 0x11a   :  { %v966_v17 = vpop.f32.mrf.mxu0 }
 0x11b   :  { %v1270_v52 = vmax.f32 %v475_v32, 0.0  ;;  %v474_v53 = vsub.f32 %v442_v33, %v458_v34  ;;  %v1276_v60 = vmul.f32 2.0, %v966_v17 }
 0x11c   :  { %v270_v18 = vpop.f32.mrf.mxu0 }
 0x11d   :  { %v1278_v61 = vmul.f32 2.0, %v270_v18  ;;  %v507_v6 = vsub.f32 0.0, %v1270_v52  ;;  %v1281_v7 = vmax.f32 %v474_v53, 0.0  ;;  %v477_v15 = vsub.f32 %v1272_v55, %v1276_v60 }
 0x11e   :  { %v969_v20 = vpop.f32.mrf.mxu0 }
 0x11f   :  { %v463_v10 = vmul.f32 2.0, %v969_v20  ;;  %v476_v14 = vsub.f32 %v1274_v59, %v1278_v61  ;;  %v493_v61 = vmax.f32 %v477_v15, 0.0 }
 0x120   :  { %v280_v23 = vpop.f32.mrf.mxu0 }
 0x121   :  { %v462_v11 = vmul.f32 2.0, %v280_v23  ;;  %v479_v28 = vsub.f32 %v447_v51, %v463_v10  ;;  %v525_v10 = vmul.f32 %v1268_v43, %v507_v6 }
 0x122   :  { %v972_v27 = vpop.f32.mrf.mxu0 }
 0x123   :  { %v465_v29 = vmul.f32 2.0, %v972_v27 }
 0x124   :  { %v290_v30 = vpop.f32.mrf.mxu0 }
 0x125   :  { %v481_v35 = vsub.f32 %v449_v24, %v465_v29  ;;  %v464_v0 = vmul.f32 2.0, %v290_v30  ;;  %v478_v29 = vsub.f32 %v446_v5, %v462_v11  ;;  %v509_v11 = vsub.f32 0.0, %v493_v61 }
 0x126   :  { %v975_v36 = vpop.f32.mrf.mxu0 }
 0x127   :  { %v467_v40 = vmul.f32 2.0, %v975_v36  ;;  %v497_v44 = vmax.f32 %v481_v35, 0.0  ;;  %v480_v21 = vsub.f32 %v448_v50, %v464_v0 }
 0x128   :  { %v300_v45 = vpop.f32.mrf.mxu0 }
 0x129   :  { %v483_v48 = vsub.f32 %v451_v31, %v467_v40  ;;  %v466_v49 = vmul.f32 2.0, %v300_v45  ;;  %v513_v62 = vsub.f32 0.0, %v497_v44 }
 0x12a   :  { %v978_v54 = vpop.f32.mrf.mxu0 }
 0x12b   :  { %v499_v56 = vmax.f32 %v483_v48, 0.0  ;;  %v482_v57 = vsub.f32 %v450_v39, %v466_v49  ;;  %v469_v58 = vmul.f32 2.0, %v978_v54  ;;  %v531_v16 = vmul.f32 %v1268_v43, %v513_v62 }
 0x12c   :  { %v310_v63 = vpop.f32.mrf.mxu0  ;;  %v496_v39 = vmax.f32 %v480_v21, 0.0  ;;  %v495_v49 = vmax.f32 %v479_v28, 0.0  ;;  %v494_v54 = vmax.f32 %v478_v29, 0.0 }
 0x12d   :  { %v515_v2 = vsub.f32 0.0, %v499_v56  ;;  %v498_v3 = vmax.f32 %v482_v57, 0.0  ;;  %v485_v4 = vsub.f32 %v453_v46, %v469_v58  ;;  %v468_v8 = vmul.f32 2.0, %v310_v63 }
 0x12e   :  { %v981_v9 = vpop.f32.mrf.mxu0  ;;  %v554_v32 = vmul.f32 1.442695, %v531_v16  ;;  %v512_v58 = vsub.f32 0.0, %v496_v39  ;;  %v511_v0 = vsub.f32 0.0, %v495_v49 }
 0x12f   :  { %v514_v12 = vsub.f32 0.0, %v498_v3  ;;  %v501_v13 = vmax.f32 %v485_v4, 0.0  ;;  %v484_v17 = vsub.f32 %v452_v47, %v468_v8  ;;  %v471_v18 = vmul.f32 2.0, %v981_v9 }
 0x130   :  { %v320_v19 = vpop.f32.mrf.mxu0  ;;  %v533_v22 = vmul.f32 %v1268_v43, %v515_v2  ;;  %1027 = vpow2.f32 %v554_v32  ;;  %v492_v3 = vmax.f32 %v476_v14, 0.0  ;;  %v510_v8 = vsub.f32 0.0, %v494_v54 }
 0x131   :  { %v517_v24 = vsub.f32 0.0, %v501_v13  ;;  %v532_v20 = vmul.f32 %v1268_v43, %v514_v12  ;;  %v500_v23 = vmax.f32 %v484_v17, 0.0  ;;  %v487_v25 = vsub.f32 %v455_v38, %v471_v18 }
 0x132   :  { %v470_v26 = vmul.f32 2.0, %v320_v19  ;;  %v984_v27 = vpop.f32.mrf.mxu0  ;;  %v558_v40 = vmul.f32 1.442695, %v533_v22  ;;  %v530_v9 = vmul.f32 %v1268_v43, %v512_v58  ;;  %v508_v15 = vsub.f32 0.0, %v492_v3 }
 0x133   :  { %v535_v30 = vmul.f32 %v1268_v43, %v517_v24  ;;  %v473_v31 = vmul.f32 2.0, %v984_v27  ;;  %v516_v33 = vsub.f32 0.0, %v500_v23  ;;  %v503_v34 = vmax.f32 %v487_v25, 0.0 }
 0x134   :  { %v486_v35 = vsub.f32 %v1266_v42, %v470_v26  ;;  %v330_v36 = vpop.f32.mrf.mxu0  ;;  %v556_v46 = vmul.f32 1.442695, %v532_v20  ;;  %1029 = vpow2.f32 %v558_v40  ;;  %v528_v16 = vmul.f32 %v1268_v43, %v510_v8 }
 0x135   :  { %v489_v44 = vsub.f32 %v1262_v37, %v473_v31  ;;  %v472_v45 = vmul.f32 2.0, %v330_v36  ;;  %v534_v38 = vmul.f32 %v1268_v43, %v516_v33  ;;  %v519_v47 = vsub.f32 0.0, %v503_v34 }
 0x136   :  { %v502_v48 = vmax.f32 %v486_v35, 0.0  ;;  %v562_v50 = vmul.f32 1.442695, %v535_v30  ;;  %1031 = vpow2.f32 %v556_v46  ;;  %v552_v17 = vmul.f32 1.442695, %v530_v9 }
 0x137   :  { %v505_v51 = vmax.f32 %v489_v44, 0.0  ;;  %v488_v53 = vsub.f32 %v1264_v41, %v472_v45  ;;  %v537_v42 = vmul.f32 %v1268_v43, %v519_v47  ;;  %v560_v56 = vmul.f32 1.442695, %v534_v38 }
 0x138   :  { %v518_v55 = vsub.f32 0.0, %v502_v48  ;;  %1033 = vpow2.f32 %v562_v50  ;;  %v506_v41 = vsub.f32 0.0, %v1281_v7  ;;  %v529_v7 = vmul.f32 %v1268_v43, %v511_v0 }
 0x139   :  { %v521_v57 = vsub.f32 0.0, %v505_v51  ;;  %v504_v37 = vmax.f32 %v488_v53, 0.0  ;;  %v566_v59 = vmul.f32 1.442695, %v537_v42  ;;  %v542_v18 = vmul.f32 1.442695, %v525_v10 }
 0x13a   :  { %v536_v60 = vmul.f32 %v1268_v43, %v518_v55  ;;  %v524_v13 = vmul.f32 %v1268_v43, %v506_v41  ;;  %v527_v19 = vmul.f32 %v1268_v43, %v509_v11  ;;  %v550_v14 = vmul.f32 1.442695, %v529_v7 }
 0x13b   :  { %v539_v62 = vmul.f32 %v1268_v43, %v521_v57  ;;  %v520_v63 = vsub.f32 0.0, %v504_v37  ;;  %1035 = vpow2.f32 %v566_v59  ;;  %v526_v6 = vmul.f32 %v1268_v43, %v508_v15 }
 0x13c   :  { %v564_v2 = vmul.f32 1.442695, %v536_v60  ;;  %1037 = vpow2.f32 %v560_v56  ;;  %v540_v52 = vmul.f32 1.442695, %v524_v13  ;;  %v548_v24 = vmul.f32 1.442695, %v528_v16 }
 0x13d   :  { %v570_v4 = vmul.f32 1.442695, %v539_v62  ;;  %v538_v5 = vmul.f32 %v1268_v43, %v520_v63  ;;  %v1308_v21 = vpop.eup %1027  ;;  %v546_v23 = vmul.f32 1.442695, %v527_v19  ;;  %v544_v27 = vmul.f32 1.442695, %v526_v6 }
 0x13e   :  { %1039 = vpow2.f32 %v564_v2  ;;  %v579_v39 = vmul.f32 %v1308_v21, %v1308_v21 }
 0x13f   :  { %1041 = vpow2.f32 %v570_v4  ;;  %v568_v12 = vmul.f32 1.442695, %v538_v5 }
 0x141   :  { %1043 = vpow2.f32 %v568_v12  ;;  %v1030_v22 = vpop.eup %1029 }
 0x142   :  { %1045 = vpow2.f32 %v552_v17  ;;  %v581_v30 = vmul.f32 %v1030_v22, %v1030_v22 }
 0x143   :  { %v1032_v20 = vpop.eup %1031  ;;  %1047 = vpow2.f32 %v542_v18 }
 0x144   :  { %1049 = vpow2.f32 %v550_v14  ;;  %v597_v38 = vadd.f32 %v1030_v22, %v581_v30  ;;  %v580_v50 = vmul.f32 %v1032_v20, %v1032_v20  ;;  %v613_v9 = vmul.f32 %v581_v30, %v581_v30 }
 0x145   :  { %v1034_v25 = vpop.eup %1033  ;;  %1051 = vpow2.f32 %v540_v52 }
 0x146   :  { %1053 = vpow2.f32 %v548_v24  ;;  %v583_v35 = vmul.f32 %v1034_v25, %v1034_v25  ;;  %v596_v17 = vadd.f32 %v1032_v20, %v580_v50  ;;  %v612_v18 = vmul.f32 %v580_v50, %v580_v50 }
 0x147   :  { %1055 = vpow2.f32 %v546_v23 }
 0x148   :  { %v1036_v26 = vpop.eup %1035  ;;  %1057 = vpow2.f32 %v544_v27  ;;  %v599_v54 = vadd.f32 %v1034_v25, %v583_v35  ;;  %v615_v42 = vmul.f32 %v583_v35, %v583_v35  ;;  %v629_v25 = vadd.f32 %v613_v9, %v597_v38 }
 0x149   :  { %v1038_v28 = vpop.eup %1037  ;;  %v585_v29 = vmul.f32 %v1036_v26, %v1036_v26  ;;  %v611_v27 = vmul.f32 %v579_v39, %v579_v39 }
 0x14a   :  { %v582_v46 = vmul.f32 %v1038_v28, %v1038_v28  ;;  %v631_v5 = vadd.f32 %v615_v42, %v599_v54  ;;  %v647_v8 = vmul.f32 %v615_v42, %v615_v42 }
 0x14b   :  { %v1040_v31 = vpop.eup %1039  ;;  %v601_v33 = vadd.f32 %v1036_v26, %v585_v29  ;;  %v617_v43 = vmul.f32 %v585_v29, %v585_v29  ;;  %v595_v26 = vadd.f32 %v1308_v21, %v579_v39  ;;  %v643_v50 = vmul.f32 %v611_v27, %v611_v27 }
 0x14c   :  { %v1042_v32 = vpop.eup %1041  ;;  %v584_v34 = vmul.f32 %v1040_v31, %v1040_v31  ;;  %v598_v60 = vadd.f32 %v1038_v28, %v582_v46  ;;  %v614_v61 = vmul.f32 %v582_v46, %v582_v46  ;;  %v663_v30 = vadd.f32 %v647_v8, %v631_v5 }
 0x14d   :  { %v587_v36 = vmul.f32 %v1042_v32, %v1042_v32  ;;  %v633_v51 = vadd.f32 %v617_v43, %v601_v33  ;;  %v649_v53 = vmul.f32 %v617_v43, %v617_v43  ;;  %v679_v20 = vmul.f32 %v647_v8, %v647_v8 }
 0x14e   :  { %v1044_v40 = vpop.eup %1043  ;;  %v600_v44 = vadd.f32 %v1040_v31, %v584_v34  ;;  %v616_v45 = vmul.f32 %v584_v34, %v584_v34  ;;  %v630_v16 = vadd.f32 %v614_v61, %v598_v60  ;;  %v646_v24 = vmul.f32 %v614_v61, %v614_v61 }
 0x14f   :  { %v603_v47 = vadd.f32 %v1042_v32, %v587_v36  ;;  %v619_v48 = vmul.f32 %v587_v36, %v587_v36  ;;  %v586_v49 = vmul.f32 %v1044_v40, %v1044_v40  ;;  %v1046_v62 = vpop.eup %1045  ;;  %v665_v4 = vadd.f32 %v649_v53, %v633_v51 }
 0x150   :  { %v632_v58 = vadd.f32 %v616_v45, %v600_v44  ;;  %v648_v59 = vmul.f32 %v616_v45, %v616_v45  ;;  %v1313_v3 = vpop.eup %1047  ;;  %v681_v13 = vmul.f32 %v649_v53, %v649_v53  ;;  %v578_v19 = vmul.f32 %v1046_v62, %v1046_v62 }
 0x151   :  { %v635_v55 = vadd.f32 %v619_v48, %v603_v47  ;;  %v651_v56 = vmul.f32 %v619_v48, %v619_v48  ;;  %v602_v57 = vadd.f32 %v1044_v40, %v586_v49  ;;  %v618_v37 = vmul.f32 %v586_v49, %v586_v49  ;;  %v1050_v10 = vpop.eup %1049 }
 0x152   :  { %v1315_v15 = vpop.eup %1051  ;;  %v664_v6 = vadd.f32 %v648_v59, %v632_v58  ;;  %v680_v22 = vmul.f32 %v648_v59, %v648_v59  ;;  %v577_v28 = vmul.f32 %v1050_v10, %v1050_v10  ;;  %v697_v29 = vadd.f32 %v681_v13, %v665_v4 }
 0x153   :  { %v667_v63 = vadd.f32 %v651_v56, %v635_v55  ;;  %v683_v41 = vmul.f32 %v651_v56, %v651_v56  ;;  %v634_v0 = vadd.f32 %v618_v37, %v602_v57  ;;  %v650_v2 = vmul.f32 %v618_v37, %v618_v37  ;;  %v1054_v14 = vpop.eup %1053 }
 0x154   :  { %v1056_v23 = vpop.eup %1055  ;;  %v645_v31 = vmul.f32 %v613_v9, %v613_v9  ;;  %v628_v33 = vadd.f32 %v612_v18, %v596_v17  ;;  %v594_v43 = vadd.f32 %v1046_v62, %v578_v19  ;;  %v610_v34 = vmul.f32 %v578_v19, %v578_v19 }
 0x155   :  { %v699_v11 = vadd.f32 %v683_v41, %v667_v63  ;;  %v666_v12 = vadd.f32 %v650_v2, %v634_v0  ;;  %v682_v7 = vmul.f32 %v650_v2, %v650_v2  ;;  %v1058_v32 = vpop.eup %1057  ;;  %v576_v35 = vmul.f32 %v1054_v14, %v1054_v14 }
 0x156   :  { %v696_v36 = vadd.f32 %v680_v22, %v664_v6  ;;  %v662_v40 = vadd.f32 %v646_v24, %v630_v16  ;;  %v678_v44 = vmul.f32 %v646_v24, %v646_v24  ;;  %v644_v45 = vmul.f32 %v612_v18, %v612_v18 }
 0x157   :  { %986 = vmatpush3.msra.mxu1 %v699_v11  ;;  %v698_v52 = vadd.f32 %v682_v7, %v666_v12  ;;  %v627_v21 = vadd.f32 %v611_v27, %v595_v26  ;;  %v593_v39 = vadd.f32 %v1050_v10, %v577_v28  ;;  %v609_v46 = vmul.f32 %v577_v28, %v577_v28 }
 0x158   :  { %987 = vmatprep.subr.mxu1 %v1097_v1  ;;  %v575_v38 = vmul.f32 %v1056_v23, %v1056_v23  ;;  %v695_v47 = vadd.f32 %v679_v20, %v663_v30  ;;  %v661_v48 = vadd.f32 %v645_v31, %v629_v25  ;;  %v677_v49 = vmul.f32 %v645_v31, %v645_v31 }
 0x159   :  { %988 = vmatpush3.msra.mxu1 %v698_v52  ;;  %v626_v51 = vadd.f32 %v610_v34, %v594_v43  ;;  %v642_v53 = vmul.f32 %v610_v34, %v610_v34  ;;  %v592_v54 = vadd.f32 %v1054_v14, %v576_v35  ;;  %v608_v42 = vmul.f32 %v576_v35, %v576_v35 }
 0x15a   :  { %989 = vmatprep.subr.mxu1 %v1097_v1  ;;  %v694_v55 = vadd.f32 %v678_v44, %v662_v40  ;;  %v660_v56 = vadd.f32 %v644_v45, %v628_v33  ;;  %v676_v57 = vmul.f32 %v644_v45, %v644_v45  ;;  %v574_v37 = vmul.f32 %v1058_v32, %v1058_v32 }
 0x15b   :  { %990 = vmatpush3.msra.mxu1 %v697_v29  ;;  %v625_v58 = vadd.f32 %v609_v46, %v593_v39  ;;  %v591_v59 = vadd.f32 %v1056_v23, %v575_v38  ;;  %v607_v60 = vmul.f32 %v575_v38, %v575_v38  ;;  %v573_v61 = vmul.f32 %v1313_v3, %v1313_v3 }
 0x15c   :  { %991 = vmatprep.subr.mxu1 %v1097_v1  ;;  %v693_v62 = vadd.f32 %v677_v49, %v661_v48  ;;  %v659_v63 = vadd.f32 %v643_v50, %v627_v21  ;;  %v675_v41 = vmul.f32 %v643_v50, %v643_v50  ;;  %v641_v0 = vmul.f32 %v609_v46, %v609_v46  ;;  %v732_v21 = vpop.trf.xlu0 }
 0x15d   :  { %992 = vmatpush3.msra.mxu1 %v696_v36  ;;  %v658_v2 = vadd.f32 %v642_v53, %v626_v51  ;;  %v674_v4 = vmul.f32 %v642_v53, %v642_v53  ;;  %v624_v5 = vadd.f32 %v608_v42, %v592_v54  ;;  %v640_v8 = vmul.f32 %v608_v42, %v608_v42 }
 0x15e   :  { %993 = vmatprep.subr.mxu1 %v1097_v1  ;;  %v692_v9 = vadd.f32 %v676_v57, %v660_v56  ;;  %v590_v10 = vadd.f32 %v1058_v32, %v574_v37  ;;  %v606_v11 = vmul.f32 %v574_v37, %v574_v37  ;;  %v572_v12 = vmul.f32 %v1315_v15, %v1315_v15 }
 0x15f   :  { %994 = vmatpush3.msra.mxu1 %v695_v47  ;;  %v623_v7 = vadd.f32 %v607_v60, %v591_v59  ;;  %v639_v13 = vmul.f32 %v607_v60, %v607_v60  ;;  %v589_v16 = vadd.f32 %v1313_v3, %v573_v61  ;;  %v691_v17 = vadd.f32 %v675_v41, %v659_v63  ;;  %v822_v47 = vld [vmem:[%s158_s22] sm:$0x1] }
 0x160   :  { %995 = vmatprep.subr.mxu1 %v1097_v1  ;;  %v657_v18 = vadd.f32 %v641_v0, %v625_v58  ;;  %v673_v19 = vmul.f32 %v641_v0, %v641_v0  ;;  %v605_v14 = vmul.f32 %v573_v61, %v573_v61  ;;  %v690_v52 = vadd.f32 %v674_v4, %v658_v2 }
 0x161   :  { %996 = vmatpush3.msra.mxu1 %v694_v55  ;;  %v656_v6 = vadd.f32 %v640_v8, %v624_v5  ;;  %v672_v22 = vmul.f32 %v640_v8, %v640_v8  ;;  %v622_v24 = vadd.f32 %v606_v11, %v590_v10  ;;  %v638_v23 = vmul.f32 %v606_v11, %v606_v11 }
 0x162   :  { %997 = vmatprep.subr.mxu1 %v1097_v1  ;;  %v588_v25 = vadd.f32 %v1315_v15, %v572_v12  ;;  %v604_v26 = vmul.f32 %v572_v12, %v572_v12  ;;  %v655_v27 = vadd.f32 %v639_v13, %v623_v7  ;;  %v689_v3 = vadd.f32 %v673_v19, %v657_v18 }
 0x163   :  { %998 = vmatpush3.msra.mxu1 %v693_v62  ;;  %v671_v28 = vmul.f32 %v639_v13, %v639_v13  ;;  %v621_v29 = vadd.f32 %v605_v14, %v589_v16  ;;  %v637_v30 = vmul.f32 %v605_v14, %v605_v14  ;;  %v688_v20 = vadd.f32 %v672_v22, %v656_v6 }
 0x164   :  { %999 = vmatprep.subr.mxu1 %v1097_v1  ;;  %v654_v31 = vadd.f32 %v638_v23, %v622_v24  ;;  %v670_v32 = vmul.f32 %v638_v23, %v638_v23  ;;  %v620_v33 = vadd.f32 %v604_v26, %v588_v25  ;;  %v636_v43 = vmul.f32 %v604_v26, %v604_v26 }
 0x165   :  { %1000 = vmatpush3.msra.mxu1 %v692_v9  ;;  %v687_v15 = vadd.f32 %v671_v28, %v655_v27  ;;  %v653_v34 = vadd.f32 %v637_v30, %v621_v29  ;;  %v669_v35 = vmul.f32 %v637_v30, %v637_v30  ;;  %v820_v46 = vstv %s819_s19 }
 0x166   :  { %1001 = vmatprep.subr.mxu1 %v1097_v1  ;;  %v686_v36 = vadd.f32 %v670_v32, %v654_v31  ;;  %v652_v40 = vadd.f32 %v636_v43, %v620_v33  ;;  %v668_v44 = vmul.f32 %v636_v43, %v636_v43 }
 0x167   :  { %1002 = vmatpush3.msra.mxu1 %v691_v17  ;;  %v685_v45 = vadd.f32 %v669_v35, %v653_v34 }
 0x168   :  { %1003 = vmatprep.subr.mxu1 %v1097_v1  ;;  %v684_v39 = vadd.f32 %v668_v44, %v652_v40 }
 0x169   :  { %1004 = vmatpush3.msra.mxu1 %v690_v52 }
 0x16a   :  { %1005 = vmatprep.subr.mxu1 %v1097_v1 }
 0x16b   :  { %1006 = vmatpush3.msra.mxu1 %v689_v3 }
 0x16c   :  { %1007 = vmatprep.subr.mxu1 %v1097_v1 }
 0x16d   :  { %1008 = vmatpush3.msra.mxu1 %v688_v20 }
 0x16e   :  { %1009 = vmatprep.subr.mxu1 %v1097_v1 }
 0x16f   :  { %1010 = vmatpush3.msra.mxu1 %v687_v15 }
 0x170   :  { %1011 = vmatprep.subr.mxu1 %v1097_v1 }
 0x171   :  { %1012 = vmatpush3.msra.mxu1 %v686_v36 }
 0x172   :  { %1013 = vmatprep.subr.mxu1 %v1097_v1 }
 0x173   :  { %1014 = vmatpush3.msra.mxu1 %v685_v45 }
 0x174   :  { %1015 = vmatprep.subr.mxu1 %v1097_v1 }
 0x175   :  { %1016 = vmatpush3.msra.mxu1 %v684_v39 }
 0x176   :  { %1018 = vmatmul.mubr.f32.vlgmr.msra.gmra.mxu1 %v732_v21 }
 0x236   :  { %v814_v38 = vpop.f32.mrf.mxu1 }
 0x237   :  { %v821_v1 = vmul.f32 %v820_v46, %v814_v38 }
 0x238   :  { %v1019_v48 = vpop.f32.mrf.mxu1 }
 0x239   :  { %v823_v49 = vmul.f32 %v822_v47, %v821_v1 }
 0x23b   :  { %824 = vst [vmem:[#allocation8] sm:$0x1] %v823_v49 }
 0x23c   :  { %1082 = shalt.err (!%p1079_p13)
}
 0x23d   :  { %834 = dma.vmem_to_hbm [thread:$0]  %s832_s24, 16, %s1361_s9, [#allocation6]  }
 0x23e   :  { %1093 = dma.done.wait [#allocation6], 16  }
 0x23f   :  { %1094 = vsyncadd [#allocation6], 4294967280 }
 0x240   :  { %838 = vsyncpa [#allocation6], 1 }
 0x241   :  { %839 = vsyncpa [#allocation7], 1 }

</bundles_post_ra>
